<compile_context>
chip_gen: v6e
topology: v6e:2x2x1
jax: 0.10.0
libtpu: 0.0.40
codegen_flags: <defaults>
</compile_context>

<pallas_src>
import jax
import jax.numpy as jnp
from jax.experimental import pallas as pl
from jax.experimental.pallas import tpu as pltpu

LANES = 128          # TPU lane width
O_PAD = 128          # lane-padded linear output width (only cols 0,1 are used)
BATCH_TILE = 1024    # max rows per grid step


def _cdiv(a, b):
    return (a + b - 1) // b


def _round_up(n, m):
    return ((n + m - 1) // m) * m


def _softplus(x):
    # numerically stable softplus: max(x, 0) + log(1 + exp(-|x|))
    return jnp.maximum(x, 0.0) + jnp.log(1.0 + jnp.exp(-jnp.abs(x)))


# ---------------------------------------------------------------------------
# Fused kernel: linear -> smooth clamp -> beta mixing -> dist ops, one pass.
# All post-MXU math in (features, batch) orientation (lane-dense rows).
# ---------------------------------------------------------------------------
def _beta_shoot_kernel(x_ref, wt_ref, b_ref, aux_ref, out_ref):
    # MXU: (tb, I) @ (I, 128) -> (tb, 128) f32. Only columns 0,1 feed the distribution.
    lin = jnp.dot(x_ref[...], wt_ref[...], preferred_element_type=jnp.float32)

    # Reorient to (features, batch) via one XLU transpose; keep only the 8 leading rows.
    lin_t = jnp.transpose(lin)               # (128, tb)
    z = lin_t[0:8, :] + b_ref[...]           # (8, tb); bias broadcast over lanes

    # softplus, then smooth upper clamp at 100
    y = _softplus(z)
    y = 100.0 - _softplus(100.0 - y)

    alpha = 1.0 + y[0:1, :]                  # (1, tb)
    beta = 1.0 + y[1:2, :]                   # (1, tb)

    a0 = aux_ref[0:1, :]
    b0 = aux_ref[1:2, :]
    act = aux_ref[2:3, :]

    num = alpha + a0                         # alpha + alpha0
    bb = beta + b0                           # beta + beta0
    den = num + bb
    p = num / den

    # Cancellation-safe logs: log p = log(num) - log(den), log(1-p) = log(bb) - log(den).
    log_den = jnp.log(den)
    log_p = jnp.log(num) - log_den
    log_1mp = jnp.log(bb) - log_den

    log_prob = act * log_p + (1.0 - act) * log_1mp        # .sum(-1, keepdim) == itself
    entropy = -(p * log_p + (1.0 - p) * log_1mp)          # .sum(-1, keepdim) == itself
    mode = (p > 0.5).astype(jnp.float32)

    # Lane-dense (4, tb) output block: rows 0..3 = p, log_prob, entropy, mode.
    out_ref[0:1, :] = p
    out_ref[1:2, :] = log_prob
    out_ref[2:3, :] = entropy
    out_ref[3:4, :] = mode


# ---------------------------------------------------------------------------
# Wrapper: batch tiling (cdiv grid, no x padding), packed aux input, row outputs.
# ---------------------------------------------------------------------------
def beta_shoot_bernoulli(x, w_t_pad, b_col, alpha0, beta0, actions):
    """Returns (probs, log_probs, entropy, mode), each of shape (B, 1)."""
    B, I = x.shape
    assert w_t_pad.shape == (I, O_PAD)
    x = x.astype(jnp.float32)

    # Batch tile: lane multiple, aim for >=2 grid steps (v7x megacore), cap so the
    # double-buffered x tile stays under ~8 MiB (v7x has only 64 MiB physical VMEM).
    tb = min(BATCH_TILE, max(LANES, _round_up(_cdiv(B, 2), LANES)))
    max_tb_vmem = max(LANES, ((8 << 20) // (2 * 4 * I)) // LANES * LANES)
    tb = min(tb, max_tb_vmem)

    grid = _cdiv(B, tb)
    b_pad = grid * tb

    # Pack the three per-row scalars into one lane-dense (3, b_pad) array.
    aux = jnp.stack(
        [alpha0.reshape(-1).astype(jnp.float32),
         beta0.reshape(-1).astype(jnp.float32),
         actions.reshape(-1).astype(jnp.float32)], axis=0)
    if b_pad != B:
        aux = jnp.pad(aux, ((0, 0), (0, b_pad - B)))

    out = pl.pallas_call(
        _beta_shoot_kernel,
        out_shape=jax.ShapeDtypeStruct((4, b_pad), jnp.float32),
        grid=(grid,),
        in_specs=[
            pl.BlockSpec((tb, I), lambda i: (i, 0)),       # x tile (ragged last block OK)
            pl.BlockSpec((I, O_PAD), lambda i: (0, 0)),    # weight (resident)
            pl.BlockSpec((8, 1), lambda i: (0, 0)),        # bias column (resident)
            pl.BlockSpec((3, tb), lambda i: (0, i)),       # packed alpha0/beta0/actions
        ],
        out_specs=pl.BlockSpec((4, tb), lambda i: (0, i)),
        compiler_params=pltpu.CompilerParams(
            dimension_semantics=("parallel",)),
    )(x, w_t_pad, b_col, aux)

    probs = out[0, :B].reshape(B, 1)
    log_probs = out[1, :B].reshape(B, 1)
    entropy = out[2, :B].reshape(B, 1)
    mode = out[3, :B].reshape(B, 1)
    return probs, log_probs, entropy, mode


# ---------------------------------------------------------------------------
# Parameter init (matches nn.init.orthogonal_ with gain, bias = 0)
# ---------------------------------------------------------------------------
def orthogonal(key, shape, gain):
    rows, cols = shape
    a = jax.random.normal(key, (max(rows, cols), min(rows, cols)), dtype=jnp.float32)
    q, r = jnp.linalg.qr(a)
    q = q * jnp.sign(jnp.diag(r))       # make decomposition unique
    if rows < cols:
        q = q.T
    return gain * q[:rows, :cols]


class FixedBernoulliResult:
    """Fused FixedBernoulli(probs=p) results (computed in-kernel)."""

    def __init__(self, probs, log_probs, entropy, mode):
        self.probs = probs
        self._log_probs = log_probs
        self._entropy = entropy
        self._mode = mode

    def log_probs(self, actions=None):   # actions already consumed by the fused kernel
        return self._log_probs

    def entropy(self):
        return self._entropy

    def mode(self):
        return self._mode

    # TODO(synk): FixedBernoulli.sample() (stochastic draws) is not implemented; only
    # probs / log_probs / entropy / mode are produced by the fused kernel.


class BetaShootBernoulliHead:
    """JAX/Pallas equivalent of the PyTorch `BetaShootBernoulli` nn.Module."""

    def __init__(self, num_inputs, num_outputs, gain=0.01, key=None):
        assert num_outputs >= 2
        key = jax.random.PRNGKey(42) if key is None else key
        w = orthogonal(key, (num_outputs, num_inputs), gain)   # torch Linear weight (O, I)
        n_cols = min(num_outputs, O_PAD)
        # Pre-transposed + lane-padded weight: (I, 128), zero padding columns.
        self.w_t = (jnp.zeros((num_inputs, O_PAD), jnp.float32)
                    .at[:, :n_cols].set(w[:n_cols, :].T))
        # Bias stored as an (8, 1) column (added after the in-kernel transpose); zeros init.
        self.b = jnp.zeros((8, 1), jnp.float32)
        self._num_outputs = num_outputs

    def forward(self, x, alpha0, beta0, actions):
        p, logp, ent, mode = beta_shoot_bernoulli(
            x, self.w_t, self.b, alpha0, beta0, actions)
        return FixedBernoulliResult(p, logp, ent, mode)

    @property
    def output_size(self):
        return self._num_outputs


# ---------------------------------------------------------------------------
if __name__ == "__main__":
    B, NUM_INPUTS, NUM_OUTPUTS = 8, 32, 16

    key = jax.random.PRNGKey(0)
    kx, ka0, kb0, kact, kp = jax.random.split(key, 5)

    x = jax.random.normal(kx, (B, NUM_INPUTS), dtype=jnp.float32)
    alpha0 = jax.random.uniform(ka0, (B, 1), minval=0.0, maxval=5.0, dtype=jnp.float32)
    beta0 = jax.random.uniform(kb0, (B, 1), minval=0.0, maxval=5.0, dtype=jnp.float32)
    actions = (jax.random.uniform(kact, (B, 1)) > 0.5).astype(jnp.float32)

    head = BetaShootBernoulliHead(NUM_INPUTS, NUM_OUTPUTS, gain=0.01, key=kp)

    dist = head.forward(x, alpha0, beta0, actions)          # single fused Pallas call
    probs = dist.probs
    log_probs = dist.log_probs(actions)
    entropy = dist.entropy()
    mode = dist.mode()
    jax.block_until_ready((probs, log_probs, entropy, mode))

    # Pure-JAX reference.
    w_t = head.w_t[:, :NUM_OUTPUTS]
    lin = x @ w_t                                           # bias is zero
    y = _softplus(lin)
    y = 100.0 - _softplus(100.0 - y)
    alpha = 1.0 + y[:, 0:1]
    beta = 1.0 + y[:, 1:2]
    p_ref = (alpha + alpha0) / (alpha + alpha0 + beta + beta0)
    logp_ref = actions * jnp.log(p_ref) + (1.0 - actions) * jnp.log(1.0 - p_ref)
    ent_ref = -(p_ref * jnp.log(p_ref) + (1.0 - p_ref) * jnp.log(1.0 - p_ref))
    mode_ref = (p_ref > 0.5).astype(jnp.float32)

    assert jnp.allclose(probs, p_ref, atol=1e-5), "probs mismatch"
    assert jnp.allclose(log_probs, logp_ref, atol=1e-5), "log_probs mismatch"
    assert jnp.allclose(entropy, ent_ref, atol=1e-5), "entropy mismatch"
    assert jnp.array_equal(mode, mode_ref), "mode mismatch"

    print("KERNEL_OK")
</pallas_src>

<mosaic_0001>
module attributes {stable_mosaic.version = 11 : i64} {
  func.func @_beta_shoot_kernel(%arg0: i32, %arg1: memref<128x32xf32, #tpu.memory_space<vmem>>, %arg2: memref<32x128xf32, #tpu.memory_space<vmem>>, %arg3: memref<8x1xf32, #tpu.memory_space<vmem>>, %arg4: memref<3x128xf32, #tpu.memory_space<vmem>>, %arg5: memref<4x128xf32, #tpu.memory_space<vmem>>) attributes {dimension_semantics = [#tpu.dimension_semantics<parallel>], iteration_bounds = array<i64: 1>, scalar_prefetch = 0 : i64, scratch_operands = 0 : i64, tpu.core_type = #tpu.core_type<tc>, window_params = [{transform_indices = @transform_0, window_bounds = array<i64: 128, 32>}, {pipeline_mode = #tpu.pipeline_mode<synchronous>, transform_indices = @transform_1, window_bounds = array<i64: 32, 128>}, {pipeline_mode = #tpu.pipeline_mode<synchronous>, transform_indices = @transform_2, window_bounds = array<i64: 8, 1>}, {transform_indices = @transform_3, window_bounds = array<i64: 3, 128>}, {transform_indices = @transform_4, window_bounds = array<i64: 4, 128>}]} {
    %c0 = arith.constant 0 : index
    %c0_0 = arith.constant 0 : index
    %0 = vector.load %arg1[%c0, %c0_0] : memref<128x32xf32, #tpu.memory_space<vmem>>, vector<128x32xf32>
    %c0_1 = arith.constant 0 : index
    %c0_2 = arith.constant 0 : index
    %1 = vector.load %arg2[%c0_1, %c0_2] : memref<32x128xf32, #tpu.memory_space<vmem>>, vector<32x128xf32>
    %cst = arith.constant dense<0.000000e+00> : vector<128x128xf32>
    %2 = tpu.matmul %0, %1, %cst {dimension_numbers = #tpu.dot_dimension_numbers<[1], [0], [0], [1], [0, 0, 1, 1], [], []>} : vector<128x32xf32>, vector<32x128xf32>, vector<128x128xf32> -> vector<128x128xf32>
    %3 = tpu.transpose %2, [1, 0] : vector<128x128xf32> -> vector<128x128xf32>
    %4 = vector.extract_strided_slice %3 {offsets = [0, 0], sizes = [8, 128], strides = [1, 1]} : vector<128x128xf32> to vector<8x128xf32>
    %c0_3 = arith.constant 0 : index
    %c0_4 = arith.constant 0 : index
    %5 = vector.load %arg3[%c0_3, %c0_4] : memref<8x1xf32, #tpu.memory_space<vmem>>, vector<8x1xf32>
    %6 = vector.broadcast %5 : vector<8x1xf32> to vector<8x128xf32>
    %7 = arith.addf %4, %6 : vector<8x128xf32>
    %cst_5 = arith.constant 0.000000e+00 : f32
    %8 = vector.broadcast %cst_5 : f32 to vector<8x128xf32>
    %9 = arith.maximumf %7, %8 : vector<8x128xf32>
    %10 = math.absf %7 : vector<8x128xf32>
    %cst_6 = arith.constant 0.000000e+00 : f32
    %11 = vector.broadcast %cst_6 : f32 to vector<8x128xf32>
    %12 = arith.subf %11, %10 : vector<8x128xf32>
    %13 = math.exp %12 : vector<8x128xf32>
    %cst_7 = arith.constant 1.000000e+00 : f32
    %14 = vector.broadcast %cst_7 : f32 to vector<8x128xf32>
    %15 = arith.addf %14, %13 : vector<8x128xf32>
    %16 = math.log %15 : vector<8x128xf32>
    %17 = arith.addf %9, %16 : vector<8x128xf32>
    %cst_8 = arith.constant 1.000000e+02 : f32
    %18 = vector.broadcast %cst_8 : f32 to vector<8x128xf32>
    %19 = arith.subf %18, %17 : vector<8x128xf32>
    %cst_9 = arith.constant 0.000000e+00 : f32
    %20 = vector.broadcast %cst_9 : f32 to vector<8x128xf32>
    %21 = arith.maximumf %19, %20 : vector<8x128xf32>
    %22 = math.absf %19 : vector<8x128xf32>
    %cst_10 = arith.constant 0.000000e+00 : f32
    %23 = vector.broadcast %cst_10 : f32 to vector<8x128xf32>
    %24 = arith.subf %23, %22 : vector<8x128xf32>
    %25 = math.exp %24 : vector<8x128xf32>
    %cst_11 = arith.constant 1.000000e+00 : f32
    %26 = vector.broadcast %cst_11 : f32 to vector<8x128xf32>
    %27 = arith.addf %26, %25 : vector<8x128xf32>
    %28 = math.log %27 : vector<8x128xf32>
    %29 = arith.addf %21, %28 : vector<8x128xf32>
    %cst_12 = arith.constant 1.000000e+02 : f32
    %30 = vector.broadcast %cst_12 : f32 to vector<8x128xf32>
    %31 = arith.subf %30, %29 : vector<8x128xf32>
    %32 = vector.extract_strided_slice %31 {offsets = [0, 0], sizes = [1, 128], strides = [1, 1]} : vector<8x128xf32> to vector<1x128xf32>
    %cst_13 = arith.constant 1.000000e+00 : f32
    %33 = vector.broadcast %cst_13 : f32 to vector<1x128xf32>
    %34 = arith.addf %33, %32 : vector<1x128xf32>
    %35 = vector.extract_strided_slice %31 {offsets = [1, 0], sizes = [1, 128], strides = [1, 1]} : vector<8x128xf32> to vector<1x128xf32>
    %cst_14 = arith.constant 1.000000e+00 : f32
    %36 = vector.broadcast %cst_14 : f32 to vector<1x128xf32>
    %37 = arith.addf %36, %35 : vector<1x128xf32>
    %c0_15 = arith.constant 0 : index
    %c0_16 = arith.constant 0 : index
    %38 = vector.load %arg4[%c0_15, %c0_16] : memref<3x128xf32, #tpu.memory_space<vmem>>, vector<1x128xf32>
    %c1 = arith.constant 1 : index
    %c0_17 = arith.constant 0 : index
    %39 = vector.load %arg4[%c1, %c0_17] : memref<3x128xf32, #tpu.memory_space<vmem>>, vector<1x128xf32>
    %c2 = arith.constant 2 : index
    %c0_18 = arith.constant 0 : index
    %40 = vector.load %arg4[%c2, %c0_18] : memref<3x128xf32, #tpu.memory_space<vmem>>, vector<1x128xf32>
    %41 = arith.addf %34, %38 : vector<1x128xf32>
    %42 = arith.addf %37, %39 : vector<1x128xf32>
    %43 = arith.addf %41, %42 : vector<1x128xf32>
    %44 = arith.divf %41, %43 : vector<1x128xf32>
    %45 = math.log %43 : vector<1x128xf32>
    %46 = math.log %41 : vector<1x128xf32>
    %47 = arith.subf %46, %45 : vector<1x128xf32>
    %48 = math.log %42 : vector<1x128xf32>
    %49 = arith.subf %48, %45 : vector<1x128xf32>
    %50 = arith.mulf %40, %47 : vector<1x128xf32>
    %cst_19 = arith.constant 1.000000e+00 : f32
    %51 = vector.broadcast %cst_19 : f32 to vector<1x128xf32>
    %52 = arith.subf %51, %40 : vector<1x128xf32>
    %53 = arith.mulf %52, %49 : vector<1x128xf32>
    %54 = arith.addf %50, %53 : vector<1x128xf32>
    %55 = arith.mulf %44, %47 : vector<1x128xf32>
    %cst_20 = arith.constant 1.000000e+00 : f32
    %56 = vector.broadcast %cst_20 : f32 to vector<1x128xf32>
    %57 = arith.subf %56, %44 : vector<1x128xf32>
    %58 = arith.mulf %57, %49 : vector<1x128xf32>
    %59 = arith.addf %55, %58 : vector<1x128xf32>
    %cst_21 = arith.constant 0.000000e+00 : f32
    %60 = vector.broadcast %cst_21 : f32 to vector<1x128xf32>
    %61 = arith.subf %60, %59 : vector<1x128xf32>
    %cst_22 = arith.constant 5.000000e-01 : f32
    %62 = vector.broadcast %cst_22 : f32 to vector<1x128xf32>
    %63 = arith.cmpf ogt, %44, %62 : vector<1x128xf32>
    %64 = arith.extui %63 : vector<1x128xi1> to vector<1x128xi32>
    %65 = arith.sitofp %64 : vector<1x128xi32> to vector<1x128xf32>
    %c0_23 = arith.constant 0 : index
    %c0_24 = arith.constant 0 : index
    %66 = vector.load %arg5[%c0_23, %c0_24] : memref<4x128xf32, #tpu.memory_space<vmem>>, vector<1x128xf32>
    tpu.vector_store %arg5[%c0_23, %c0_24], %44 {strides = array<i32>} : memref<4x128xf32, #tpu.memory_space<vmem>>, vector<1x128xf32>,
    %c1_25 = arith.constant 1 : index
    %c0_26 = arith.constant 0 : index
    %67 = vector.load %arg5[%c1_25, %c0_26] : memref<4x128xf32, #tpu.memory_space<vmem>>, vector<1x128xf32>
    tpu.vector_store %arg5[%c1_25, %c0_26], %54 {strides = array<i32>} : memref<4x128xf32, #tpu.memory_space<vmem>>, vector<1x128xf32>,
    %c2_27 = arith.constant 2 : index
    %c0_28 = arith.constant 0 : index
    %68 = vector.load %arg5[%c2_27, %c0_28] : memref<4x128xf32, #tpu.memory_space<vmem>>, vector<1x128xf32>
    tpu.vector_store %arg5[%c2_27, %c0_28], %61 {strides = array<i32>} : memref<4x128xf32, #tpu.memory_space<vmem>>, vector<1x128xf32>,
    %c3 = arith.constant 3 : index
    %c0_29 = arith.constant 0 : index
    %69 = vector.load %arg5[%c3, %c0_29] : memref<4x128xf32, #tpu.memory_space<vmem>>, vector<1x128xf32>
    tpu.vector_store %arg5[%c3, %c0_29], %65 {strides = array<i32>} : memref<4x128xf32, #tpu.memory_space<vmem>>, vector<1x128xf32>,
    return
  }
  func.func @transform_0(%arg0: i32) -> (i32, i32) {
    %c0_i32 = arith.constant 0 : i32
    %c0_i32_0 = arith.constant 0 : i32
    return %arg0, %c0_i32 : i32, i32
  }
  func.func @transform_1(%arg0: i32) -> (i32, i32) {
    %c0_i32 = arith.constant 0 : i32
    %c0_i32_0 = arith.constant 0 : i32
    %c0_i32_1 = arith.constant 0 : i32
    return %c0_i32, %c0_i32_0 : i32, i32
  }
  func.func @transform_2(%arg0: i32) -> (i32, i32) {
    %c0_i32 = arith.constant 0 : i32
    %c0_i32_0 = arith.constant 0 : i32
    %c0_i32_1 = arith.constant 0 : i32
    return %c0_i32, %c0_i32_0 : i32, i32
  }
  func.func @transform_3(%arg0: i32) -> (i32, i32) {
    %c0_i32 = arith.constant 0 : i32
    %c0_i32_0 = arith.constant 0 : i32
    return %c0_i32, %arg0 : i32, i32
  }
  func.func @transform_4(%arg0: i32) -> (i32, i32) {
    %c0_i32 = arith.constant 0 : i32
    %c0_i32_0 = arith.constant 0 : i32
    return %c0_i32, %arg0 : i32, i32
  }
}

</mosaic_0001>

<bundles_post_ra>
// kernel: tpu_custom_call.1
= control target key start
LH: loop header
LB: loop body
LE: loop exit
PB: predicated region body
PF: predicated region fallthrough
CT: control target
= control target key end

     0   :  { %9 = vsyncpa [#allocation3], 0  ;;  %s622_s0 = inlined_call_operand.vmem [shape: f32[8,32], index: 0, kind: input, shape index: {}]   ;;  %s623_s1 = inlined_call_operand.hbm [shape: f32[32,128], index: 1, kind: input, shape index: {}]   ;;  %s624_s2 = inlined_call_operand.vmem [shape: f32[8,1], index: 2, kind: input, shape index: {}]   ;;  %s625_s3 = inlined_call_operand.vmem [shape: f32[3,128], index: 3, kind: input, shape index: {}]   ;;  %s626_s4 = inlined_call_operand.hbm [shape: f32[4,128], index: 4, kind: output, shape index: {}]  }
   0x1   :  { %10 = vsyncpa [#allocation4], 0  ;;  %s509_s15 = smov [#allocation2]  }
   0x2   :  { %s18_s16 = sshll.u32 %s509_s15, 4  ;;  %s19_s16 = int_to_ptr.vmem [resolvable:$true] %s18_s16 }
   0x3   :  { %s473_s17 = scalar_lea.vmem %s19_s16, 512  ;;  %p478_p1 = scmp.lt.s32.totalorder %s19_s16, %s19_s16 }
   0x4   :  { %p474_p0 = scmp.ne.s32.totalorder %s19_s16, %s473_s17  ;;  %p479_p2 = scmp.lt.s32.totalorder %s473_s17, %s473_s17 }
   0x6   :  { %p480_p3 = por %p479_p2, %p478_p1 }
   0x8   :  { %p481_p4 = pnand %p480_p3, %p474_p0 }
   0xa   :  { %484 = shalt.err (!%p481_p4)
}
   0xb   :  { %s510_s18 = smov 128   ;;  %s511_s19 = smov 8  }
   0xc   :  { %24 = dma.hbm_to_vmem [thread:$0]  %s623_s1, 512, %s19_s16, [#allocation3], %s510_s18, %s510_s18, %s511_s19  }
   0xd   :  { %505 = dma.done.wait [#allocation3], 512  }
   0xe   :  { %506 = vsyncadd [#allocation3], 4294966784  ;;  %v512_v0 = vmov 0   ;;  %vm52_vm0 = vcmask 261120   ;;  %v51_v1 = vld [vmem:[#allocation2 + $0x18] sm:$0xff]  ;;  %v50_v2 = vld [vmem:[#allocation2 + $0x10] sm:$0xff] }
   0xf   :  { %448 = vset.pattern.permute.xlu0 %v512_v0  ;;  %402 = vmatprep.subr.mxu0 %v51_v1  ;;  %v32_v3 = vld [vmem:[%s622_s0] sm:$0xff]  ;;  %v49_v4 = vld [vmem:[#allocation2 + $0x8] sm:$0xff]  ;;  %v34_v7 = vld [vmem:[%s622_s0 + $0x10] sm:$0xff]  ;;  %s514_s6 = smov [#allocation5]  }
  0x10   :  { %434 = vmatprep.subr.mxu1 %v51_v1  ;;  %403 = vmatpush3.msra.mxu0 %v51_v1  ;;  %v48_v5 = vld [vmem:[#allocation2] sm:$0xff]  ;;  %v33_v6 = vld [vmem:[%s622_s0 + $0x8] sm:$0xff]  ;;  %v42_v11 = vld [vmem:[%s622_s0 + $0x50] sm:$0xff]  ;;  %s356_s7 = sshll.u32 %s514_s6, 4  ;;  %s357_s7 = int_to_ptr.vmem [resolvable:$true] %s356_s7 }
  0x11   :  { %410 = vmatprep.mubr.msk.f32.mxu0 %vm52_vm0, %v32_v3  ;;  %404 = vmatprep.subr.mxu0 %v50_v2  ;;  %v40_v8 = vld [vmem:[%s622_s0 + $0x40] sm:$0xff]  ;;  %v41_v9 = vld [vmem:[%s622_s0 + $0x48] sm:$0xff]  ;;  %v35_v12 = vld [vmem:[%s622_s0 + $0x18] sm:$0xff]  ;;  %s485_s8 = scalar_lea.vmem %s357_s7, 64  ;;  %p490_p6 = scmp.lt.s32.totalorder %s357_s7, %s357_s7 }
  0x12   :  { %438 = vmatpush3.msra.mxu1 %v51_v1  ;;  %405 = vmatpush3.msra.mxu0 %v50_v2  ;;  %v278_v10 = vld [vmem:[%s624_s2] sm:$0xff]  ;;  %v43_v14 = vld [vmem:[%s622_s0 + $0x58] sm:$0xff]  ;;  %v37_v16 = vld [vmem:[%s622_s0 + $0x28] sm:$0xff]  ;;  %p486_p5 = scmp.ne.s32.totalorder %s357_s7, %s485_s8  ;;  %p491_p7 = scmp.lt.s32.totalorder %s485_s8, %s485_s8 }
  0x13   :  { %435 = vmatprep.subr.mxu1 %v50_v2  ;;  %406 = vmatprep.subr.mxu0 %v49_v4  ;;  %v36_v13 = vld [vmem:[%s622_s0 + $0x20] sm:$0xff]  ;;  %v38_v17 = vld [vmem:[%s622_s0 + $0x30] sm:$0xff]  ;;  %v45_v18 = vld [vmem:[%s622_s0 + $0x68] sm:$0xff] }
  0x14   :  { %439 = vmatpush3.msra.mxu1 %v50_v2  ;;  %407 = vmatpush3.msra.mxu0 %v49_v4  ;;  %v44_v15 = vld [vmem:[%s622_s0 + $0x60] sm:$0xff]  ;;  %v46_v19 = vld [vmem:[%s622_s0 + $0x70] sm:$0xff]  ;;  %v39_v20 = vld [vmem:[%s622_s0 + $0x38] sm:$0xff]  ;;  %p492_p8 = por %p491_p7, %p490_p6 }
  0x15   :  { %436 = vmatprep.subr.mxu1 %v49_v4  ;;  %408 = vmatprep.subr.mxu0 %v48_v5  ;;  %v47_v21 = vld [vmem:[%s622_s0 + $0x78] sm:$0xff]  ;;  %v307_v59 = vld [vmem:[%s625_s3 + $0x1] sm:$0x1]  ;;  %v306_v63 = vld [vmem:[%s625_s3] sm:$0x1] }
  0x16   :  { %440 = vmatpush3.msra.mxu1 %v49_v4  ;;  %409 = vmatpush3.msra.mxu0 %v48_v5  ;;  %v311_v61 = vrot.slane %v307_v59, 7  ;;  %p493_p9 = pnand %p492_p8, %p486_p5 }
  0x17   :  { %437 = vmatprep.subr.mxu1 %v48_v5  ;;  %411 = vmatmul.mubr.msk.f32.vlgmr.msra.gmra.mxu0 %vm52_vm0, %v33_v6 }
  0x18   :  { %441 = vmatpush3.msra.mxu1 %v48_v5  ;;  %413 = vmatprep.mubr.msk.f32.mxu0 %vm52_vm0, %v34_v7 }
  0x19   :  { %422 = vmatprep.mubr.msk.f32.mxu1 %vm52_vm0, %v40_v8  ;;  %281 = vperm.xlu0 %448, %v278_v10  }
  0x1a   :  { %423 = vmatmul.mubr.msk.f32.vlgmr.msra.gmra.mxu1 %vm52_vm0, %v41_v9 }
  0x1b   :  { %425 = vmatprep.mubr.msk.f32.mxu1 %vm52_vm0, %v42_v11  ;;  %414 = vmatmul.mubr.msk.f32.gmra.mxu0 %vm52_vm0, %v35_v12 }
  0x1c   :  { %416 = vmatprep.mubr.msk.f32.mxu0 %vm52_vm0, %v36_v13 }
  0x1e   :  { %426 = vmatmul.mubr.msk.f32.gmra.mxu1 %vm52_vm0, %v43_v14  ;;  %v513_v14 = vmov 0.0  }
  0x1f   :  { %428 = vmatprep.mubr.msk.f32.mxu1 %vm52_vm0, %v44_v15  ;;  %417 = vmatmul.mubr.msk.f32.gmra.mxu0 %vm52_vm0, %v37_v16  ;;  %v308_v16 = vld [vmem:[%s625_s3 + $0x2] sm:$0x1] }
  0x20   :  { %419 = vmatprep.mubr.msk.f32.mxu0 %vm52_vm0, %v38_v17 }
  0x22   :  { %429 = vmatmul.mubr.msk.f32.gmra.mxu1 %vm52_vm0, %v45_v18 }
  0x23   :  { %431 = vmatprep.mubr.msk.f32.mxu1 %vm52_vm0, %v46_v19  ;;  %420 = vmatmul.mubr.msk.f32.gmra.mxu0 %vm52_vm0, %v39_v20  ;;  %v332_v19 = vsub.f32 1.0, %v308_v16 }
  0x26   :  { %432 = vmatmul.mubr.msk.f32.gmra.mxu1 %vm52_vm0, %v47_v21 }
  0x94   :  { %v282_v38 = vpop.permute.xlu0 %281 }
  0xd7   :  { %v412_v22 = vpop.f32.mrf.mxu0 }
  0xd9   :  { %v167_v23 = vpop.f32.mrf.mxu0 }
  0xda   :  { %246 = vxpose.xlu0.b32.start [1/16] (narrow) %v167_v23, 8  ;;  %v424_v30 = vpop.f32.mrf.mxu1 }
  0xdb   :  { %v415_v24 = vpop.f32.mrf.mxu0 }
  0xdc   :  { %v207_v31 = vpop.f32.mrf.mxu1 }
  0xdd   :  { %v177_v25 = vpop.f32.mrf.mxu0 }
  0xde   :  { %247 = vxpose.xlu0.b32.cont [2/16] (narrow) %v412_v22, 8  ;;  %v427_v32 = vpop.f32.mrf.mxu1 }
  0xdf   :  { %v418_v26 = vpop.f32.mrf.mxu0 }
  0xe0   :  { %v217_v33 = vpop.f32.mrf.mxu1 }
  0xe1   :  { %v187_v27 = vpop.f32.mrf.mxu0 }
  0xe2   :  { %248 = vxpose.xlu0.b32.cont [3/16] (narrow) %v177_v25, 8  ;;  %v430_v34 = vpop.f32.mrf.mxu1 }
  0xe3   :  { %v421_v28 = vpop.f32.mrf.mxu0 }
  0xe4   :  { %v227_v35 = vpop.f32.mrf.mxu1 }
  0xe5   :  { %v197_v29 = vpop.f32.mrf.mxu0 }
  0xe6   :  { %249 = vxpose.xlu0.b32.cont [4/16] (narrow) %v415_v24, 8  ;;  %v433_v36 = vpop.f32.mrf.mxu1 }
  0xe8   :  { %v237_v37 = vpop.f32.mrf.mxu1 }
  0xea   :  { %250 = vxpose.xlu0.b32.cont [5/16] (narrow) %v187_v27, 8 }
  0xee   :  { %251 = vxpose.xlu0.b32.cont [6/16] (narrow) %v418_v26, 8 }
  0xf2   :  { %252 = vxpose.xlu0.b32.cont [7/16] (narrow) %v197_v29, 8 }
  0xf6   :  { %253 = vxpose.xlu0.b32.cont [8/16] (narrow) %v421_v28, 8 }
  0xfa   :  { %254 = vxpose.xlu0.b32.cont [9/16] (narrow) %v207_v31, 8 }
  0xfe   :  { %255 = vxpose.xlu0.b32.cont [10/16] (narrow) %v424_v30, 8 }
 0x102   :  { %256 = vxpose.xlu0.b32.cont [11/16] (narrow) %v217_v33, 8 }
 0x106   :  { %257 = vxpose.xlu0.b32.cont [12/16] (narrow) %v427_v32, 8 }
 0x10a   :  { %258 = vxpose.xlu0.b32.cont [13/16] (narrow) %v227_v35, 8 }
 0x10e   :  { %259 = vxpose.xlu0.b32.cont [14/16] (narrow) %v430_v34, 8 }
 0x112   :  { %260 = vxpose.xlu0.b32.cont [15/16] (narrow) %v237_v37, 8 }
 0x116   :  { %261 = vxpose.xlu0.b32.end [16/16] (narrow) %v433_v36, 8 }
 0x156   :  { %v262_v39 = vpop.trf.xlu0 }
 0x157   :  { %v284_v40 = vadd.f32 %v282_v38, %v262_v39 }
 0x159   :  { %v286_v41 = vand.u32 2147483647, %v284_v40  ;;  %v285_v47 = vmax.f32 %v284_v40, 0.0 }
 0x15b   :  { %v287_v42 = vsub.f32 0.0, %v286_v41 }
 0x15d   :  { %v288_v43 = vmul.f32 1.442695, %v287_v42 }
 0x15f   :  { %449 = vpow2.f32 %v288_v43 }
 0x16c   :  { %v450_v44 = vpop.eup %449 }
 0x16d   :  { %v290_v45 = vadd.f32 1.0, %v450_v44 }
 0x16f   :  { %451 = vlog2.f32 %v290_v45 }
 0x17c   :  { %v452_v46 = vpop.eup %451 }
 0x17d   :  { %v292_v48 = vmul.f32 0.6931472, %v452_v46 }
 0x17f   :  { %v293_v49 = vadd.f32 %v292_v48, %v285_v47 }
 0x181   :  { %v294_v50 = vsub.f32 100.0, %v293_v49 }
 0x183   :  { %v296_v51 = vand.u32 2147483647, %v294_v50  ;;  %v295_v57 = vmax.f32 %v294_v50, 0.0 }
 0x185   :  { %v297_v52 = vsub.f32 0.0, %v296_v51 }
 0x187   :  { %v298_v53 = vmul.f32 1.442695, %v297_v52 }
 0x189   :  { %453 = vpow2.f32 %v298_v53 }
 0x196   :  { %v454_v54 = vpop.eup %453 }
 0x197   :  { %v300_v55 = vadd.f32 1.0, %v454_v54 }
 0x199   :  { %455 = vlog2.f32 %v300_v55 }
 0x1a6   :  { %v456_v56 = vpop.eup %455 }
 0x1a7   :  { %v302_v58 = vmul.f32 0.6931472, %v456_v56 }
 0x1a9   :  { %v303_v60 = vadd.f32 %v302_v58, %v295_v57 }
 0x1ab   :  { %v304_v62 = vsub.f32 100.0, %v303_v60 }
 0x1ad   :  { %v305_v0 = vadd.f32 1.0, %v304_v62 }
 0x1af   :  { %v309_v1 = vadd.f32 %v306_v63, %v305_v0  ;;  %v313_v2 = vadd.f32 %v311_v61, %v305_v0 }
 0x1b1   :  { %v315_v3 = vrot.slane %v313_v2, 1  ;;  %457 = vlog2.f32 %v309_v1 }
 0x1b2   :  { %459 = vlog2.f32 %v313_v2 }
 0x1b3   :  { %v317_v4 = vadd.f32 %v315_v3, %v309_v1 }
 0x1b5   :  { %461 = vrcp.f32 %v317_v4 }
 0x1b6   :  { %463 = vlog2.f32 %v317_v4 }
 0x1be   :  { %v458_v5 = vpop.eup %457 }
 0x1bf   :  { %v460_v6 = vpop.eup %459  ;;  %v323_v11 = vmul.f32 0.6931472, %v458_v5 }
 0x1c0   :  { %v326_v12 = vmul.f32 0.6931472, %v460_v6 }
 0x1c2   :  { %v462_v7 = vpop.eup %461 }
 0x1c3   :  { %v464_v8 = vpop.eup %463  ;;  %v319_v9 = vmul.f32 %v462_v7, %v309_v1 }
 0x1c4   :  { %v321_v10 = vmul.f32 0.6931472, %v464_v8 }
 0x1c5   :  { %vm343_vm1 = vcmp.gt.f32.partialorder %v319_v9, 0.5  ;;  %346 = vst [vmem:[#allocation5] sm:$0x1] %v319_v9  ;;  %v339_v21 = vsub.f32 1.0, %v319_v9 }
 0x1c6   :  { %v328_v13 = vrot.slane %v321_v10, 7  ;;  %v381_v15 = vsel %vm343_vm1, 1.0, %v513_v14  ;;  %v324_v17 = vsub.f32 %v323_v11, %v321_v10 }
 0x1c7   :  { %349 = vst [vmem:[#allocation5 + $0x3] sm:$0x1] %v381_v15 }
 0x1c8   :  { %v330_v18 = vsub.f32 %v326_v12, %v328_v13  ;;  %v331_v22 = vmul.f32 %v324_v17, %v308_v16  ;;  %v338_v24 = vmul.f32 %v324_v17, %v319_v9 }
 0x1ca   :  { %v334_v20 = vrot.slane %v330_v18, 1 }
 0x1cc   :  { %v336_v23 = vmul.f32 %v334_v20, %v332_v19  ;;  %v340_v25 = vmul.f32 %v339_v21, %v334_v20 }
 0x1ce   :  { %v337_v26 = vadd.f32 %v336_v23, %v331_v22  ;;  %v341_v27 = vadd.f32 %v340_v25, %v338_v24 }
 0x1d0   :  { %v342_v28 = vsub.f32 0.0, %v341_v27  ;;  %347 = vst [vmem:[#allocation5 + $0x1] sm:$0x1] %v337_v26 }
 0x1d2   :  { %348 = vst [vmem:[#allocation5 + $0x2] sm:$0x1] %v342_v28 }
 0x1d3   :  { %496 = shalt.err (!%p493_p9)
}
 0x1d4   :  { %359 = dma.vmem_to_hbm [thread:$0]  %s357_s7, 64, %s626_s4, [#allocation4]  }
 0x1d5   :  { %507 = dma.done.wait [#allocation4], 64  }
 0x1d6   :  { %508 = vsyncadd [#allocation4], 4294967232 }
 0x1d7   :  { %363 = vsyncpa [#allocation3], 1 }
 0x1d8   :  { %364 = vsyncpa [#allocation4], 1 }

</bundles_post_ra>
